<compile_context>
chip_gen: v5e
topology: v5e:2x2
jax: 0.10.0
libtpu: 0.0.40
codegen_flags: <defaults>
</compile_context>

<pallas_src>
import functools

import jax
import jax.numpy as jnp
from jax.experimental import pallas as pl
from jax.experimental.pallas import tpu as pltpu


def _round_up(x, m):
    return (x + m - 1) // m * m


# ---------------------------------------------------------------------------
# Pass 1 (BN path): tiled MXU matmul + per-channel sum / sum-of-squares.
# a_ref: (TM, Kp) bf16, w_ref: (Kp, Cp) bf16, conv_ref: (TM, Cp) f32,
# sum_ref / sumsq_ref: (8, Cp) f32 resident accumulators (all 8 rows identical).
def conv_stats_kernel(a_ref, w_ref, conv_ref, sum_ref, sumsq_ref):
    i = pl.program_id(0)

    @pl.when(i == 0)
    def _():
        sum_ref[...] = jnp.zeros_like(sum_ref)
        sumsq_ref[...] = jnp.zeros_like(sumsq_ref)

    conv = jnp.dot(a_ref[...], w_ref[...], preferred_element_type=jnp.float32)
    conv_ref[...] = conv  # single lane-dense store of the conv tile

    # Per-channel (column) sums on the MXU instead of an XLU axis-0 reduce.
    # ones is (8, TM) so every operand / result stays (8,128)-tile aligned.
    ones = jnp.ones((8, conv.shape[0]), jnp.float32)
    sum_ref[...] += jnp.dot(ones, conv, preferred_element_type=jnp.float32)
    sumsq_ref[...] += jnp.dot(ones, conv * conv,
                              preferred_element_type=jnp.float32)


# ---------------------------------------------------------------------------
# Pass 2 (BN path): normalize + affine + LeakyReLU, single fused epilogue.
def bn_lrelu_kernel(sum_ref, sumsq_ref, gamma_ref, beta_ref, conv_ref, o_ref, *,
                    m_real, eps, negative_slope):
    inv_m = 1.0 / m_real
    s1 = sum_ref[0:1, :]
    s2 = sumsq_ref[0:1, :]
    mean = s1 * inv_m
    var = s2 * inv_m - mean * mean            # one-pass E[x^2] - mean^2, f32
    inv_std = jax.lax.rsqrt(var + eps)
    scale = gamma_ref[...] * inv_std          # fold BN into per-channel scale/shift
    shift = beta_ref[...] - mean * scale
    y = conv_ref[...] * scale + shift         # single traversal of the tile
    o_ref[...] = jnp.where(y >= 0, y, negative_slope * y)   # single store


# ---------------------------------------------------------------------------
# batch_norm=False path: conv + bias only (matches the PyTorch module: no ReLU).
def conv_bias_kernel(a_ref, w_ref, b_ref, o_ref):
    acc = jnp.dot(a_ref[...], w_ref[...], preferred_element_type=jnp.float32)
    o_ref[...] = acc + b_ref[...]


# ---------------------------------------------------------------------------
def cnn_block(x_nchw, weight, bias, gamma, beta, *, batch_norm=True,
              negative_slope=0.1, eps=1e-5, tm_max=512):
    """Forward pass of CNNBlock. x_nchw: (N, Cin, H, W), weight: (Cout, Cin, KH, KW)."""
    N, Cin, H, W = x_nchw.shape
    Cout, _, KH, KW = weight.shape
    Hout, Wout = H - KH + 1, W - KW + 1      # stride=1, padding=0 (Conv2d defaults)

    # ---- glue: NCHW -> NHWC, im2col (bf16 operands for the MXU) ------------
    # TODO(synk): the im2col matrix is KH*KW x the activation bytes in HBM; an
    # in-kernel tap accumulation (grid axis over KH*KW with shifted-window
    # index maps) would cut A traffic ~9x but is not implemented here.
    x = jnp.transpose(x_nchw, (0, 2, 3, 1))  # (N, H, W, Cin)
    cols = []
    for kh in range(KH):
        for kw in range(KW):
            cols.append(x[:, kh:kh + Hout, kw:kw + Wout, :])
    patches = jnp.concatenate(cols, axis=-1)  # (N, Hout, Wout, KH*KW*Cin)

    M = N * Hout * Wout
    K = KH * KW * Cin
    Cp = _round_up(Cout, 128)                 # lane-dense output channels
    Kp = _round_up(K, 128)                    # aligned contraction dim
    TM = min(tm_max, _round_up(M, 8))         # M tile (multiple of 8 sublanes)
    Mp = _round_up(M, TM)
    n_tiles = Mp // TM

    a_mat = patches.reshape(M, K).astype(jnp.bfloat16)
    a_mat = jnp.pad(a_mat, ((0, Mp - M), (0, Kp - K)))   # zero rows/cols: inert

    # weight (Cout, Cin, KH, KW) -> (KH, KW, Cin, Cout) -> (K, Cout), matching
    # the im2col tap order (kh, kw, then cin) above.
    w_mat = jnp.transpose(weight, (2, 3, 1, 0)).reshape(K, Cout).astype(jnp.bfloat16)
    w_mat = jnp.pad(w_mat, ((0, Kp - K), (0, Cp - Cout)))

    g2 = jnp.pad(gamma.reshape(1, Cout).astype(jnp.float32), ((0, 0), (0, Cp - Cout)))
    bt2 = jnp.pad(beta.reshape(1, Cout).astype(jnp.float32), ((0, 0), (0, Cp - Cout)))
    b2 = jnp.pad(bias.reshape(1, Cout).astype(jnp.float32), ((0, 0), (0, Cp - Cout)))

    if batch_norm:
        # ---- pass 1: matmul + per-channel sum / sumsq ----------------------
        # Conv bias is dropped: BN mean subtraction cancels it exactly.  The
        # zero-padded rows of a_mat yield all-zero conv rows, so they do not
        # perturb the sums; we divide by the real M in pass 2.
        conv_flat, csum, csumsq = pl.pallas_call(
            conv_stats_kernel,
            out_shape=(jax.ShapeDtypeStruct((Mp, Cp), jnp.float32),
                       jax.ShapeDtypeStruct((8, Cp), jnp.float32),
                       jax.ShapeDtypeStruct((8, Cp), jnp.float32)),
            grid=(n_tiles,),
            in_specs=[pl.BlockSpec((TM, Kp), lambda i: (i, 0)),
                      pl.BlockSpec((Kp, Cp), lambda i: (0, 0))],
            out_specs=(pl.BlockSpec((TM, Cp), lambda i: (i, 0)),
                       pl.BlockSpec((8, Cp), lambda i: (0, 0)),
                       pl.BlockSpec((8, Cp), lambda i: (0, 0))),
            compiler_params=pltpu.CompilerParams(
                dimension_semantics=("arbitrary",)),  # stats are resident accumulators
        )(a_mat, w_mat)

        # ---- pass 2: fused normalize + affine + LeakyReLU -------------------
        kern2 = functools.partial(bn_lrelu_kernel, m_real=float(M), eps=eps,
                                  negative_slope=negative_slope)
        out_flat = pl.pallas_call(
            kern2,
            out_shape=jax.ShapeDtypeStruct((Mp, Cp), jnp.float32),
            grid=(n_tiles,),
            in_specs=[pl.BlockSpec((8, Cp), lambda i: (0, 0)),
                      pl.BlockSpec((8, Cp), lambda i: (0, 0)),
                      pl.BlockSpec((1, Cp), lambda i: (0, 0)),
                      pl.BlockSpec((1, Cp), lambda i: (0, 0)),
                      pl.BlockSpec((TM, Cp), lambda i: (i, 0))],
            out_specs=pl.BlockSpec((TM, Cp), lambda i: (i, 0)),
            compiler_params=pltpu.CompilerParams(
                dimension_semantics=("parallel",)),   # megacore-shardable on v7x
        )(csum, csumsq, g2, bt2, conv_flat)
    else:
        out_flat = pl.pallas_call(
            conv_bias_kernel,
            out_shape=jax.ShapeDtypeStruct((Mp, Cp), jnp.float32),
            grid=(n_tiles,),
            in_specs=[pl.BlockSpec((TM, Kp), lambda i: (i, 0)),
                      pl.BlockSpec((Kp, Cp), lambda i: (0, 0)),
                      pl.BlockSpec((1, Cp), lambda i: (0, 0))],
            out_specs=pl.BlockSpec((TM, Cp), lambda i: (i, 0)),
            compiler_params=pltpu.CompilerParams(
                dimension_semantics=("parallel",)),
        )(a_mat, w_mat, b2)

    # ---- glue: strip padding, back to NCHW ---------------------------------
    out = out_flat[:M, :Cout].reshape(N, Hout, Wout, Cout)
    return jnp.transpose(out, (0, 3, 1, 2))  # (N, Cout, Hout, Wout)


# ---------------------------------------------------------------------------
def _reference_bn(x_nchw, weight, bias, gamma, beta, *, eps=1e-5, slope=0.1):
    conv = jax.lax.conv_general_dilated(
        x_nchw, weight, window_strides=(1, 1), padding="VALID",
        dimension_numbers=("NCHW", "OIHW", "NCHW"))
    conv = conv + bias[None, :, None, None]
    mean = jnp.mean(conv, axis=(0, 2, 3), keepdims=True)
    var = jnp.mean(jnp.square(conv - mean), axis=(0, 2, 3), keepdims=True)
    y = (conv - mean) * jax.lax.rsqrt(var + eps)
    y = y * gamma[None, :, None, None] + beta[None, :, None, None]
    return jnp.where(y >= 0, y, slope * y)


def _reference_conv(x_nchw, weight, bias):
    conv = jax.lax.conv_general_dilated(
        x_nchw, weight, window_strides=(1, 1), padding="VALID",
        dimension_numbers=("NCHW", "OIHW", "NCHW"))
    return conv + bias[None, :, None, None]


if __name__ == "__main__":
    key = jax.random.PRNGKey(0)
    k1, k2, k3, k4, k5 = jax.random.split(key, 5)

    # Small shapes: batch=2, in_channels=4, out_channels=8, kernel=3, spatial=16
    N, Cin, H, W = 2, 4, 16, 16
    Cout, KH, KW = 8, 3, 3

    x = jax.random.normal(k1, (N, Cin, H, W), jnp.float32)
    weight = 0.1 * jax.random.normal(k2, (Cout, Cin, KH, KW), jnp.float32)
    bias = 0.1 * jax.random.normal(k3, (Cout,), jnp.float32)
    gamma = 1.0 + 0.1 * jax.random.normal(k4, (Cout,), jnp.float32)
    beta = 0.1 * jax.random.normal(k5, (Cout,), jnp.float32)

    # BN path (module default)
    out = jax.block_until_ready(
        cnn_block(x, weight, bias, gamma, beta, batch_norm=True))
    ref = _reference_bn(x, weight, bias, gamma, beta)
    assert out.shape == (N, Cout, H - KH + 1, W - KW + 1), out.shape
    assert jnp.allclose(out, ref, atol=2e-2, rtol=2e-2), "BN path mismatch vs reference"

    # conv-only path (batch_norm=False: no BN, no LeakyReLU, bias kept)
    out_nb = jax.block_until_ready(
        cnn_block(x, weight, bias, gamma, beta, batch_norm=False))
    ref_nb = _reference_conv(x, weight, bias)
    assert jnp.allclose(out_nb, ref_nb, atol=2e-2, rtol=2e-2), "conv-only path mismatch"

    print("KERNEL_OK")
</pallas_src>

<mosaic_0001>
module attributes {stable_mosaic.version = 11 : i64} {
  func.func @conv_stats_kernel(%arg0: i32, %arg1: memref<392x128xbf16, #tpu.memory_space<vmem>>, %arg2: memref<128x128xbf16, #tpu.memory_space<vmem>>, %arg3: memref<392x128xf32, #tpu.memory_space<vmem>>, %arg4: memref<8x128xf32, #tpu.memory_space<vmem>>, %arg5: memref<8x128xf32, #tpu.memory_space<vmem>>) attributes {dimension_semantics = [#tpu.dimension_semantics<arbitrary>], iteration_bounds = array<i64: 1>, scalar_prefetch = 0 : i64, scratch_operands = 0 : i64, tpu.core_type = #tpu.core_type<tc>, window_params = [{transform_indices = @transform_0, window_bounds = array<i64: 392, 128>}, {pipeline_mode = #tpu.pipeline_mode<synchronous>, transform_indices = @transform_1, window_bounds = array<i64: 128, 128>}, {transform_indices = @transform_2, window_bounds = array<i64: 392, 128>}, {pipeline_mode = #tpu.pipeline_mode<synchronous>, transform_indices = @transform_3, window_bounds = array<i64: 8, 128>}, {pipeline_mode = #tpu.pipeline_mode<synchronous>, transform_indices = @transform_4, window_bounds = array<i64: 8, 128>}]} {
    %c0_i32 = arith.constant 0 : i32
    %0 = arith.cmpi eq, %arg0, %c0_i32 : i32
    %1 = arith.extui %0 : i1 to i32
    %c0_i32_0 = arith.constant 0 : i32
    %2 = arith.cmpi ne, %1, %c0_i32_0 : i32
    scf.if %2 {
      %cst_17 = arith.constant 0.000000e+00 : f32
      %17 = vector.broadcast %cst_17 : f32 to vector<8x128xf32>
      %c0_18 = arith.constant 0 : index
      %c0_19 = arith.constant 0 : index
      %18 = vector.load %arg4[%c0_18, %c0_19] : memref<8x128xf32, #tpu.memory_space<vmem>>, vector<8x128xf32>
      tpu.vector_store %arg4[%c0_18, %c0_19], %17 {strides = array<i32>} : memref<8x128xf32, #tpu.memory_space<vmem>>, vector<8x128xf32>,
      %cst_20 = arith.constant 0.000000e+00 : f32
      %19 = vector.broadcast %cst_20 : f32 to vector<8x128xf32>
      %c0_21 = arith.constant 0 : index
      %c0_22 = arith.constant 0 : index
      %20 = vector.load %arg5[%c0_21, %c0_22] : memref<8x128xf32, #tpu.memory_space<vmem>>, vector<8x128xf32>
      tpu.vector_store %arg5[%c0_21, %c0_22], %19 {strides = array<i32>} : memref<8x128xf32, #tpu.memory_space<vmem>>, vector<8x128xf32>,
    } else {
    }
    %c0 = arith.constant 0 : index
    %c0_1 = arith.constant 0 : index
    %3 = vector.load %arg1[%c0, %c0_1] : memref<392x128xbf16, #tpu.memory_space<vmem>>, vector<392x128xbf16>
    %c0_2 = arith.constant 0 : index
    %c0_3 = arith.constant 0 : index
    %4 = vector.load %arg2[%c0_2, %c0_3] : memref<128x128xbf16, #tpu.memory_space<vmem>>, vector<128x128xbf16>
    %cst = arith.constant dense<0.000000e+00> : vector<392x128xf32>
    %5 = tpu.matmul %3, %4, %cst {dimension_numbers = #tpu.dot_dimension_numbers<[1], [0], [0], [1], [0, 0, 1, 1], [], []>} : vector<392x128xbf16>, vector<128x128xbf16>, vector<392x128xf32> -> vector<392x128xf32>
    %c0_4 = arith.constant 0 : index
    %c0_5 = arith.constant 0 : index
    %6 = vector.load %arg3[%c0_4, %c0_5] : memref<392x128xf32, #tpu.memory_space<vmem>>, vector<392x128xf32>
    tpu.vector_store %arg3[%c0_4, %c0_5], %5 {strides = array<i32>} : memref<392x128xf32, #tpu.memory_space<vmem>>, vector<392x128xf32>,
    %cst_6 = arith.constant 1.000000e+00 : f32
    %7 = vector.broadcast %cst_6 : f32 to vector<8x392xf32>
    %c0_7 = arith.constant 0 : index
    %c0_8 = arith.constant 0 : index
    %8 = vector.load %arg4[%c0_7, %c0_8] : memref<8x128xf32, #tpu.memory_space<vmem>>, vector<8x128xf32>
    %cst_9 = arith.constant dense<0.000000e+00> : vector<8x128xf32>
    %9 = tpu.matmul %7, %5, %cst_9 {dimension_numbers = #tpu.dot_dimension_numbers<[1], [0], [0], [1], [0, 0, 1, 1], [], []>} : vector<8x392xf32>, vector<392x128xf32>, vector<8x128xf32> -> vector<8x128xf32>
    %10 = arith.addf %8, %9 : vector<8x128xf32>
    %c0_10 = arith.constant 0 : index
    %c0_11 = arith.constant 0 : index
    %11 = vector.load %arg4[%c0_10, %c0_11] : memref<8x128xf32, #tpu.memory_space<vmem>>, vector<8x128xf32>
    tpu.vector_store %arg4[%c0_10, %c0_11], %10 {strides = array<i32>} : memref<8x128xf32, #tpu.memory_space<vmem>>, vector<8x128xf32>,
    %c0_12 = arith.constant 0 : index
    %c0_13 = arith.constant 0 : index
    %12 = vector.load %arg5[%c0_12, %c0_13] : memref<8x128xf32, #tpu.memory_space<vmem>>, vector<8x128xf32>
    %13 = arith.mulf %5, %5 : vector<392x128xf32>
    %cst_14 = arith.constant dense<0.000000e+00> : vector<8x128xf32>
    %14 = tpu.matmul %7, %13, %cst_14 {dimension_numbers = #tpu.dot_dimension_numbers<[1], [0], [0], [1], [0, 0, 1, 1], [], []>} : vector<8x392xf32>, vector<392x128xf32>, vector<8x128xf32> -> vector<8x128xf32>
    %15 = arith.addf %12, %14 : vector<8x128xf32>
    %c0_15 = arith.constant 0 : index
    %c0_16 = arith.constant 0 : index
    %16 = vector.load %arg5[%c0_15, %c0_16] : memref<8x128xf32, #tpu.memory_space<vmem>>, vector<8x128xf32>
    tpu.vector_store %arg5[%c0_15, %c0_16], %15 {strides = array<i32>} : memref<8x128xf32, #tpu.memory_space<vmem>>, vector<8x128xf32>,
    return
  }
  func.func @transform_0(%arg0: i32) -> (i32, i32) {
    %c0_i32 = arith.constant 0 : i32
    %c0_i32_0 = arith.constant 0 : i32
    return %arg0, %c0_i32 : i32, i32
  }
  func.func @transform_1(%arg0: i32) -> (i32, i32) {
    %c0_i32 = arith.constant 0 : i32
    %c0_i32_0 = arith.constant 0 : i32
    %c0_i32_1 = arith.constant 0 : i32
    return %c0_i32, %c0_i32_0 : i32, i32
  }
  func.func @transform_2(%arg0: i32) -> (i32, i32) {
    %c0_i32 = arith.constant 0 : i32
    %c0_i32_0 = arith.constant 0 : i32
    return %arg0, %c0_i32 : i32, i32
  }
  func.func @transform_3(%arg0: i32) -> (i32, i32) {
    %c0_i32 = arith.constant 0 : i32
    %c0_i32_0 = arith.constant 0 : i32
    %c0_i32_1 = arith.constant 0 : i32
    return %c0_i32, %c0_i32_0 : i32, i32
  }
  func.func @transform_4(%arg0: i32) -> (i32, i32) {
    %c0_i32 = arith.constant 0 : i32
    %c0_i32_0 = arith.constant 0 : i32
    %c0_i32_1 = arith.constant 0 : i32
    return %c0_i32, %c0_i32_0 : i32, i32
  }
}

</mosaic_0001>

<bundles_post_ra>
// kernel: tpu_custom_call.1
= control target key start
LH: loop header
LB: loop body
LE: loop exit
PB: predicated region body
PF: predicated region fallthrough
CT: control target
= control target key end

     0   :  { %10 = vsyncpa [#allocation3], 0  ;;  %s1404_s0 = inlined_call_operand.hbm [shape: bf16[392,128], index: 0, kind: input, shape index: {}]   ;;  %s1405_s1 = inlined_call_operand.hbm [shape: bf16[128,128], index: 1, kind: input, shape index: {}]   ;;  %s1406_s2 = inlined_call_operand.hbm [shape: f32[392,128], index: 2, kind: output, shape index: {0}]   ;;  %s1407_s3 = inlined_call_operand.hbm [shape: f32[8,128], index: 3, kind: output, shape index: {1}]   ;;  %s1408_s4 = inlined_call_operand.hbm [shape: f32[8,128], index: 4, kind: output, shape index: {2}]  }
   0x1   :  { %11 = vsyncpa [#allocation6], 0 }
   0x2   :  { %12 = vsyncpa [#allocation4], 0 }
   0x3   :  { %13 = vsyncpa [#allocation9], 0  ;;  %s18_s17 = sshll.u32 %s1404_s0, 4  ;;  %s1092_s18 = smov [#allocation2]   ;;  %s19_s17 = int_to_ptr.hbm [resolvable:$true] %s18_s17 }
   0x4   :  { %s20_s19 = sshll.u32 %s1092_s18, 4  ;;  %s31_s22 = sshll.u32 %s1405_s1, 4  ;;  %s21_s19 = int_to_ptr.vmem [resolvable:$true] %s20_s19  ;;  %s32_s22 = int_to_ptr.hbm [resolvable:$true] %s31_s22 }
   0x5   :  { %s1093_s23 = smov 64   ;;  %s1094_s24 = smov 4  }
   0x6   :  { %26 = dma.hbm_to_vmem [thread:$0]  %s19_s17, 3136, %s21_s19, [#allocation3], %s1093_s23, %s1093_s23, %s1094_s24  }
   0x7   :  { %s1095_s25 = smov [#allocation5]  }
   0x8   :  { %s33_s26 = sshll.u32 %s1095_s25, 4  ;;  %s34_s26 = int_to_ptr.vmem [resolvable:$true] %s33_s26 }
   0x9   :  { %39 = dma.hbm_to_vmem [thread:$0]  %s32_s22, 1024, %s34_s26, [#allocation6], %s1093_s23, %s1093_s23, %s1094_s24  }
   0xa   :  { %1084 = dma.done.wait [#allocation3], 3136  }
   0xb   :  { %1085 = vsyncadd [#allocation3], 4294964160 }
   0xc   :  { %1086 = dma.done.wait [#allocation6], 1024  }
   0xd   :  { %1087 = vsyncadd [#allocation6], 4294966272  ;;  %v928_v0 = vld [vmem:[#allocation5 + $0x38] sm:$0xff]  ;;  %v927_v1 = vld [vmem:[#allocation5 + $0x30] sm:$0xff]  ;;  %vm498_vm0 = vcmask 64512   ;;  %s722_s27 = sshll.u32 %s1406_s2, 4  ;;  %s723_s27 = int_to_ptr.hbm [resolvable:$true] %s722_s27 }
   0xe   :  { %315 = vmatpush.bf16.msra.mxu0 %v928_v0  ;;  %929 = vmatpush.bf16.msra.mxu1 %v928_v0  ;;  %v926_v2 = vld [vmem:[#allocation5 + $0x28] sm:$0xff]  ;;  %v925_v3 = vld [vmem:[#allocation5 + $0x20] sm:$0xff]  ;;  %v924_v4 = vld [vmem:[#allocation5 + $0x18] sm:$0xff]  ;;  %s1097_s28 = smov [#allocation7]   ;;  %s1098_s30 = smov 128  }
   0xf   :  { %931 = vmatpush.bf16.msra.mxu3 %v928_v0  ;;  %930 = vmatpush.bf16.msra.mxu2 %v928_v0  ;;  %v923_v5 = vld [vmem:[#allocation5 + $0x10] sm:$0xff]  ;;  %v922_v6 = vld [vmem:[#allocation5 + $0x8] sm:$0xff]  ;;  %v921_v7 = vld [vmem:[#allocation5] sm:$0xff]  ;;  %s720_s29 = sshll.u32 %s1097_s28, 4  ;;  %s1099_s5 = smov 8   ;;  %s721_s29 = int_to_ptr.vmem [resolvable:$true] %s720_s29 }
  0x10   :  { %v897_v8 = vld [vmem:[#allocation2] sm:$0xff]  ;;  %v906_v9 = vld [vmem:[#allocation2 + $0x48] sm:$0xff]  ;;  %v916_v10 = vld [vmem:[#allocation2 + $0x98] sm:$0xff]  ;;  %s1100_s6 = smov [#allocation8]   ;;  %s736_s10 = sshll.u32 %s1407_s3, 4  ;;  %s737_s10 = int_to_ptr.hbm [resolvable:$true] %s736_s10 }
  0x11   :  { %v912_v11 = vld [vmem:[#allocation2 + $0x78] sm:$0xff]  ;;  %v898_v12 = vld [vmem:[#allocation2 + $0x8] sm:$0xff]  ;;  %v907_v13 = vld [vmem:[#allocation2 + $0x50] sm:$0xff]  ;;  %s734_s7 = sshll.u32 %s1100_s6, 4  ;;  %s1101_s2 = smov [#allocation10]   ;;  %s735_s7 = int_to_ptr.vmem [resolvable:$true] %s734_s7 }
  0x12   :  { %316 = vmatpush.bf16.msra.mxu0 %v927_v1  ;;  %932 = vmatpush.bf16.msra.mxu1 %v927_v1  ;;  %v917_v14 = vld [vmem:[#allocation2 + $0xa0] sm:$0xff]  ;;  %v899_v16 = vld [vmem:[#allocation2 + $0x10] sm:$0xff]  ;;  %v908_v17 = vld [vmem:[#allocation2 + $0x58] sm:$0xff]  ;;  %s745_s11 = sshll.u32 %s1101_s2, 4  ;;  %s747_s14 = sshll.u32 %s1408_s4, 4  ;;  %s746_s11 = int_to_ptr.vmem [resolvable:$true] %s745_s11  ;;  %s748_s14 = int_to_ptr.hbm [resolvable:$true] %s747_s14 }
  0x13   :  { %934 = vmatpush.bf16.msra.mxu3 %v927_v1  ;;  %933 = vmatpush.bf16.msra.mxu2 %v927_v1  ;;  %v913_v15 = vld [vmem:[#allocation2 + $0x80] sm:$0xff]  ;;  %v918_v18 = vld [vmem:[#allocation2 + $0xa8] sm:$0xff]  ;;  %v900_v20 = vld [vmem:[#allocation2 + $0x18] sm:$0xff] }
  0x14   :  { %v914_v19 = vld [vmem:[#allocation2 + $0x88] sm:$0xff]  ;;  %v909_v21 = vld [vmem:[#allocation2 + $0x60] sm:$0xff]  ;;  %v919_v22 = vld [vmem:[#allocation2 + $0xb0] sm:$0xff] }
  0x15   :  { %v915_v23 = vld [vmem:[#allocation2 + $0x90] sm:$0xff]  ;;  %v901_v24 = vld [vmem:[#allocation2 + $0x20] sm:$0xff]  ;;  %v910_v25 = vld [vmem:[#allocation2 + $0x68] sm:$0xff] }
  0x16   :  { %317 = vmatpush.bf16.msra.mxu0 %v926_v2  ;;  %935 = vmatpush.bf16.msra.mxu1 %v926_v2  ;;  %v920_v26 = vld [vmem:[#allocation2 + $0xb8] sm:$0xff]  ;;  %v902_v27 = vld [vmem:[#allocation2 + $0x28] sm:$0xff]  ;;  %v911_v28 = vld [vmem:[#allocation2 + $0x70] sm:$0xff] }
  0x17   :  { %937 = vmatpush.bf16.msra.mxu3 %v926_v2  ;;  %936 = vmatpush.bf16.msra.mxu2 %v926_v2  ;;  %v903_v29 = vld [vmem:[#allocation2 + $0x30] sm:$0xff]  ;;  %v102_v30 = vld [vmem:[#allocation2 + $0xc0] sm:$0xf]  ;;  %v904_v33 = vld [vmem:[#allocation2 + $0x38] sm:$0xff] }
  0x18   :  { %v216_v31 = vunpack.c.l.b16 %v102_v30  ;;  %v905_v34 = vld [vmem:[#allocation2 + $0x40] sm:$0xff] }
  0x1a   :  { %318 = vmatpush.bf16.msra.mxu0 %v925_v3  ;;  %938 = vmatpush.bf16.msra.mxu1 %v925_v3  ;;  %v241_v32 = vpack.c.b16 %v216_v31, %v216_v31 }
  0x1b   :  { %940 = vmatpush.bf16.msra.mxu3 %v925_v3  ;;  %939 = vmatpush.bf16.msra.mxu2 %v925_v3 }
  0x1e   :  { %319 = vmatpush.bf16.msra.mxu0 %v924_v4  ;;  %941 = vmatpush.bf16.msra.mxu1 %v924_v4 }
  0x1f   :  { %943 = vmatpush.bf16.msra.mxu3 %v924_v4  ;;  %942 = vmatpush.bf16.msra.mxu2 %v924_v4 }
  0x22   :  { %320 = vmatpush.bf16.msra.mxu0 %v923_v5  ;;  %944 = vmatpush.bf16.msra.mxu1 %v923_v5 }
  0x23   :  { %946 = vmatpush.bf16.msra.mxu3 %v923_v5  ;;  %945 = vmatpush.bf16.msra.mxu2 %v923_v5 }
  0x26   :  { %321 = vmatpush.bf16.msra.mxu0 %v922_v6  ;;  %947 = vmatpush.bf16.msra.mxu1 %v922_v6 }
  0x27   :  { %949 = vmatpush.bf16.msra.mxu3 %v922_v6  ;;  %948 = vmatpush.bf16.msra.mxu2 %v922_v6 }
  0x2a   :  { %322 = vmatpush.bf16.msra.mxu0 %v921_v7  ;;  %950 = vmatpush.bf16.msra.mxu1 %v921_v7 }
  0x2b   :  { %952 = vmatpush.bf16.msra.mxu3 %v921_v7  ;;  %951 = vmatpush.bf16.msra.mxu2 %v921_v7 }
  0x2d   :  { %323 = vmatmul.bf16.vlgmr.msra.gmra.mxu0 %v897_v8  ;;  %368 = vmatmul.bf16.vlgmr.msra.gmra.mxu1 %v906_v9 }
  0x2e   :  { %418 = vmatmul.bf16.vlgmr.msra.gmra.mxu3 %v916_v10  ;;  %398 = vmatmul.bf16.vlgmr.msra.gmra.mxu2 %v912_v11 }
  0x3d   :  { %328 = vmatmul.bf16.gmra.mxu0 %v898_v12  ;;  %373 = vmatmul.bf16.gmra.mxu1 %v907_v13 }
  0x3e   :  { %423 = vmatmul.bf16.gmra.mxu3 %v917_v14  ;;  %403 = vmatmul.bf16.gmra.mxu2 %v913_v15 }
  0x4d   :  { %333 = vmatmul.bf16.gmra.mxu0 %v899_v16  ;;  %378 = vmatmul.bf16.gmra.mxu1 %v908_v17 }
  0x4e   :  { %428 = vmatmul.bf16.gmra.mxu3 %v918_v18  ;;  %408 = vmatmul.bf16.gmra.mxu2 %v914_v19 }
  0x5d   :  { %338 = vmatmul.bf16.gmra.mxu0 %v900_v20  ;;  %383 = vmatmul.bf16.gmra.mxu1 %v909_v21  ;;  %v1096_v21 = vmov 1.0  }
  0x5e   :  { %433 = vmatmul.bf16.gmra.mxu3 %v919_v22  ;;  %413 = vmatmul.bf16.gmra.mxu2 %v915_v23 }
  0x6d   :  { %343 = vmatmul.bf16.gmra.mxu0 %v901_v24  ;;  %388 = vmatmul.bf16.gmra.mxu1 %v910_v25 }
  0x6e   :  { %438 = vmatmul.bf16.gmra.mxu3 %v920_v26 }
  0x7d   :  { %348 = vmatmul.bf16.gmra.mxu0 %v902_v27  ;;  %393 = vmatmul.bf16.gmra.mxu1 %v911_v28 }
  0x7e   :  { %443 = vmatmul.bf16.gmra.mxu3 %v241_v32 }
  0x8d   :  { %353 = vmatmul.bf16.gmra.mxu0 %v903_v29 }
  0x9d   :  { %358 = vmatmul.bf16.gmra.mxu0 %v904_v33 }
  0xaa   :  { %v1133_v35 = vpop.f32.mrf.mxu0  ;;  %v1135_v36 = vpop.f32.mrf.mxu1 }
  0xab   :  { %448 = vst [vmem:[#allocation7] sm:$0xff] %v1133_v35 }
  0xac   :  { %466 = vst [vmem:[#allocation7 + $0x90] sm:$0xff] %v1135_v36 }
  0xad   :  { %363 = vmatmul.bf16.gmra.mxu0 %v905_v34  ;;  %v603_v34 = vmul.f32 %v1135_v36, %v1135_v36 }
  0xb1   :  { %v1139_v37 = vpop.f32.mrf.mxu3  ;;  %v1148_v40 = vpop.f32.mrf.mxu2 }
  0xb2   :  { %486 = vst [vmem:[#allocation7 + $0x130] sm:$0xff] %v1139_v37  ;;  %v1142_v38 = vpop.f32.mrf.mxu0  ;;  %v1144_v39 = vpop.f32.mrf.mxu1  ;;  %v615_v16 = vmul.f32 %v1148_v40, %v1148_v40 }
  0xb3   :  { %449 = vst [vmem:[#allocation7 + $0x8] sm:$0xff] %v1142_v38  ;;  %v604_v33 = vmul.f32 %v1144_v39, %v1144_v39 }
  0xb4   :  { %467 = vst [vmem:[#allocation7 + $0x98] sm:$0xff] %v1144_v39 }
  0xb5   :  { %478 = vst [vmem:[#allocation7 + $0xf0] sm:$0xff] %v1148_v40 }
  0xb9   :  { %v1151_v41 = vpop.f32.mrf.mxu3  ;;  %v1160_v44 = vpop.f32.mrf.mxu2 }
  0xba   :  { %487 = vst [vmem:[#allocation7 + $0x138] sm:$0xff] %v1151_v41  ;;  %v1154_v42 = vpop.f32.mrf.mxu0  ;;  %v1156_v43 = vpop.f32.mrf.mxu1  ;;  %522 = vmatpush.msrb.mxu2 %v1160_v44  ;;  %v616_v15 = vmul.f32 %v1160_v44, %v1160_v44 }
  0xbb   :  { %450 = vst [vmem:[#allocation7 + $0x10] sm:$0xff] %v1154_v42  ;;  %v605_v32 = vmul.f32 %v1156_v43, %v1156_v43 }
  0xbc   :  { %468 = vst [vmem:[#allocation7 + $0xa0] sm:$0xff] %v1156_v43  ;;  %523 = vmatpush.msrb.mxu2 %v1148_v40 }
  0xbd   :  { %479 = vst [vmem:[#allocation7 + $0xf8] sm:$0xff] %v1160_v44 }
  0xc1   :  { %v1165_v45 = vpop.f32.mrf.mxu3  ;;  %v1174_v48 = vpop.f32.mrf.mxu2 }
  0xc2   :  { %488 = vst [vmem:[#allocation7 + $0x140] sm:$0xff] %v1165_v45  ;;  %v1168_v46 = vpop.f32.mrf.mxu0  ;;  %v1170_v47 = vpop.f32.mrf.mxu1 }
  0xc3   :  { %451 = vst [vmem:[#allocation7 + $0x18] sm:$0xff] %v1168_v46  ;;  %v606_v31 = vmul.f32 %v1170_v47, %v1170_v47 }
  0xc4   :  { %469 = vst [vmem:[#allocation7 + $0xa8] sm:$0xff] %v1170_v47 }
  0xc5   :  { %480 = vst [vmem:[#allocation7 + $0x100] sm:$0xff] %v1174_v48 }
  0xc9   :  { %v1177_v49 = vpop.f32.mrf.mxu3  ;;  %v1186_v52 = vpop.f32.mrf.mxu2 }
  0xca   :  { %489 = vst [vmem:[#allocation7 + $0x148] sm:$0xff] %v1177_v49  ;;  %v1180_v50 = vpop.f32.mrf.mxu0  ;;  %v1182_v51 = vpop.f32.mrf.mxu1 }
  0xcb   :  { %452 = vst [vmem:[#allocation7 + $0x20] sm:$0xff] %v1180_v50  ;;  %v607_v29 = vmul.f32 %v1182_v51, %v1182_v51 }
  0xcc   :  { %470 = vst [vmem:[#allocation7 + $0xb0] sm:$0xff] %v1182_v51 }
  0xcd   :  { %481 = vst [vmem:[#allocation7 + $0x108] sm:$0xff] %v1186_v52 }
  0xd1   :  { %v1189_v53 = vpop.f32.mrf.mxu3  ;;  %v1198_v56 = vpop.f32.mrf.mxu2 }
  0xd2   :  { %490 = vst [vmem:[#allocation7 + $0x150] sm:$0xff] %v1189_v53  ;;  %v1192_v54 = vpop.f32.mrf.mxu0  ;;  %v1194_v55 = vpop.f32.mrf.mxu1 }
  0xd3   :  { %453 = vst [vmem:[#allocation7 + $0x28] sm:$0xff] %v1192_v54  ;;  %v608_v28 = vmul.f32 %v1194_v55, %v1194_v55 }
  0xd4   :  { %471 = vst [vmem:[#allocation7 + $0xb8] sm:$0xff] %v1194_v55 }
  0xd5   :  { %482 = vst [vmem:[#allocation7 + $0x110] sm:$0xff] %v1198_v56 }
  0xd9   :  { %v1201_v57 = vpop.f32.mrf.mxu3  ;;  %v1210_v60 = vpop.f32.mrf.mxu2 }
  0xda   :  { %491 = vst [vmem:[#allocation7 + $0x158] sm:$0xff] %v1201_v57  ;;  %v1204_v58 = vpop.f32.mrf.mxu0  ;;  %v1206_v59 = vpop.f32.mrf.mxu1 }
  0xdb   :  { %454 = vst [vmem:[#allocation7 + $0x30] sm:$0xff] %v1204_v58  ;;  %v609_v27 = vmul.f32 %v1206_v59, %v1206_v59 }
  0xdc   :  { %472 = vst [vmem:[#allocation7 + $0xc0] sm:$0xff] %v1206_v59 }
  0xdd   :  { %483 = vst [vmem:[#allocation7 + $0x118] sm:$0xff] %v1210_v60 }
  0xe1   :  { %v1213_v61 = vpop.f32.mrf.mxu3  ;;  %v1222_v0 = vpop.f32.mrf.mxu2 }
  0xe2   :  { %492 = vst [vmem:[#allocation7 + $0x160] sm:$0xff] %v1213_v61  ;;  %v1216_v62 = vpop.f32.mrf.mxu0  ;;  %v1218_v63 = vpop.f32.mrf.mxu1 }
  0xe3   :  { %455 = vst [vmem:[#allocation7 + $0x38] sm:$0xff] %v1216_v62  ;;  %v610_v26 = vmul.f32 %v1218_v63, %v1218_v63 }
  0xe4   :  { %473 = vst [vmem:[#allocation7 + $0xc8] sm:$0xff] %v1218_v63 }
  0xe5   :  { %484 = vst [vmem:[#allocation7 + $0x120] sm:$0xff] %v1222_v0 }
  0xe9   :  { %v1225_v1 = vpop.f32.mrf.mxu3  ;;  %v1234_v4 = vpop.f32.mrf.mxu2 }
  0xea   :  { %493 = vst [vmem:[#allocation7 + $0x168] sm:$0xff] %v1225_v1  ;;  %v1228_v2 = vpop.f32.mrf.mxu0  ;;  %v1230_v3 = vpop.f32.mrf.mxu1 }
  0xeb   :  { %456 = vst [vmem:[#allocation7 + $0x40] sm:$0xff] %v1228_v2  ;;  %v611_v23 = vmul.f32 %v1230_v3, %v1230_v3 }
  0xec   :  { %474 = vst [vmem:[#allocation7 + $0xd0] sm:$0xff] %v1230_v3 }
  0xed   :  { %485 = vst [vmem:[#allocation7 + $0x128] sm:$0xff] %v1234_v4 }
  0xf1   :  { %v1237_v5 = vpop.f32.mrf.mxu3 }
  0xf2   :  { %494 = vst [vmem:[#allocation7 + $0x170] sm:$0xff] %v1237_v5  ;;  %v1240_v6 = vpop.f32.mrf.mxu0  ;;  %v391_v7 = vpop.f32.mrf.mxu1 }
  0xf3   :  { %457 = vst [vmem:[#allocation7 + $0x48] sm:$0xff] %v1240_v6  ;;  %v612_v22 = vmul.f32 %v391_v7, %v391_v7 }
  0xf4   :  { %475 = vst [vmem:[#allocation7 + $0xd8] sm:$0xff] %v391_v7 }
  0xf9   :  { %v1243_v8 = vpop.f32.mrf.mxu3 }
  0xfa   :  { %495 = vst [vmem:[#allocation7 + $0x178] sm:$0xff] %v1243_v8  ;;  %542 = vmatpush.msrb.mxu3 %v1243_v8  ;;  %v1247_v9 = vpop.f32.mrf.mxu0  ;;  %v394_v10 = vpop.f32.mrf.mxu1 }
  0xfb   :  { %458 = vst [vmem:[#allocation7 + $0x50] sm:$0xff] %v1247_v9  ;;  %v613_v20 = vmul.f32 %v394_v10, %v394_v10 }
  0xfc   :  { %476 = vst [vmem:[#allocation7 + $0xe0] sm:$0xff] %v394_v10  ;;  %543 = vmatpush.msrb.mxu3 %v1237_v5 }
  0xfe   :  { %544 = vmatpush.msrb.mxu3 %v1225_v1 }
 0x100   :  { %545 = vmatpush.msrb.mxu3 %v1213_v61 }
 0x101   :  { %v1287_v18 = vpop.f32.mrf.mxu3 }
 0x102   :  { %546 = vmatpush.msrb.mxu3 %v1201_v57  ;;  %v1254_v11 = vpop.f32.mrf.mxu0  ;;  %v396_v12 = vpop.f32.mrf.mxu1  ;;  %496 = vst [vmem:[#allocation7 + $0x180] sm:$0xff] %v1287_v18 }
 0x103   :  { %459 = vst [vmem:[#allocation7 + $0x58] sm:$0xff] %v1254_v11  ;;  %524 = vmatpush.msrb.mxu2 %v396_v12  ;;  %v614_v19 = vmul.f32 %v396_v12, %v396_v12 }
 0x104   :  { %477 = vst [vmem:[#allocation7 + $0xe8] sm:$0xff] %v396_v12  ;;  %547 = vmatpush.msrb.mxu3 %v1189_v53 }
 0x105   :  { %525 = vmatpush.msrb.mxu2 %v394_v10  ;;  %v630_v10 = vmul.f32 %v1225_v1, %v1225_v1  ;;  %v589_v1 = vmul.f32 %v1180_v50, %v1180_v50 }
 0x106   :  { %548 = vmatpush.msrb.mxu3 %v1177_v49 }
 0x107   :  { %526 = vmatpush.msrb.mxu2 %v391_v7  ;;  %v593_v7 = vmul.f32 %v1228_v2, %v1228_v2 }
 0x108   :  { %549 = vmatpush.msrb.mxu3 %v1165_v45 }
 0x109   :  { %527 = vmatpush.msrb.mxu2 %v1230_v3  ;;  %v446_v25 = vpop.f32.mrf.mxu3  ;;  %v632_v3 = vmul.f32 %v1243_v8, %v1243_v8  ;;  %v591_v8 = vmul.f32 %v1204_v58, %v1204_v58 }
 0x10a   :  { %550 = vmatpush.msrb.mxu3 %v1151_v41  ;;  %v1262_v13 = vpop.f32.mrf.mxu0 }
 0x10b   :  { %460 = vst [vmem:[#allocation7 + $0x60] sm:$0xff] %v1262_v13  ;;  %528 = vmatpush.msrb.mxu2 %v1218_v63  ;;  %v594_v63 = vmul.f32 %v1240_v6, %v1240_v6 }
 0x10c   :  { %551 = vmatpush.msrb.mxu3 %v1139_v37 }
 0x10d   :  { %529 = vmatpush.msrb.mxu2 %v1206_v59  ;;  %v595_v59 = vmul.f32 %v1247_v9, %v1247_v9 }
 0x10e   :  { %552 = vmatpush.msrb.mxu3 %v1234_v4 }
 0x10f   :  { %530 = vmatpush.msrb.mxu2 %v1194_v55  ;;  %v596_v55 = vmul.f32 %v1254_v11, %v1254_v11 }
 0x110   :  { %553 = vmatpush.msrb.mxu3 %v1222_v0 }
 0x111   :  { %531 = vmatpush.msrb.mxu2 %v1182_v51  ;;  %v597_v51 = vmul.f32 %v1262_v13, %v1262_v13 }
 0x112   :  { %554 = vmatpush.msrb.mxu3 %v1210_v60  ;;  %v1273_v14 = vpop.f32.mrf.mxu0 }
 0x113   :  { %461 = vst [vmem:[#allocation7 + $0x68] sm:$0xff] %v1273_v14  ;;  %532 = vmatpush.msrb.mxu2 %v1170_v47 }
 0x114   :  { %555 = vmatpush.msrb.mxu3 %v1198_v56 }
 0x115   :  { %533 = vmatpush.msrb.mxu2 %v1156_v43 }
 0x116   :  { %556 = vmatpush.msrb.mxu3 %v1186_v52 }
 0x117   :  { %534 = vmatpush.msrb.mxu2 %v1144_v39 }
 0x118   :  { %557 = vmatpush.msrb.mxu3 %v1174_v48 }
 0x119   :  { %535 = vmatpush.msrb.mxu2 %v1135_v36  ;;  %558 = vmatmul.f32.vlgmr.msrb.gmra.mxu3 %v1096_v21  ;;  %v598_v36 = vmul.f32 %v1273_v14, %v1273_v14 }
 0x11a   :  { %654 = vmatpush.msra.mxu3 %v616_v15  ;;  %v359_v17 = vpop.f32.mrf.mxu0 }
 0x11b   :  { %462 = vst [vmem:[#allocation7 + $0x70] sm:$0xff] %v359_v17  ;;  %v599_v47 = vmul.f32 %v359_v17, %v359_v17 }
 0x11c   :  { %655 = vmatpush.msra.mxu3 %v615_v16 }
 0x11e   :  { %656 = vmatpush.msra.mxu3 %v614_v19 }
 0x120   :  { %657 = vmatpush.msra.mxu3 %v613_v20 }
 0x122   :  { %658 = vmatpush.msra.mxu3 %v612_v22  ;;  %v361_v24 = vpop.f32.mrf.mxu0 }
 0x123   :  { %463 = vst [vmem:[#allocation7 + $0x78] sm:$0xff] %v361_v24  ;;  %502 = vmatpush.msrb.mxu1 %v361_v24  ;;  %v600_v43 = vmul.f32 %v361_v24, %v361_v24 }
 0x124   :  { %659 = vmatpush.msra.mxu3 %v611_v23 }
 0x125   :  { %503 = vmatpush.msrb.mxu1 %v359_v17 }
 0x126   :  { %660 = vmatpush.msra.mxu3 %v610_v26 }
 0x127   :  { %504 = vmatpush.msrb.mxu1 %v1273_v14 }
 0x128   :  { %661 = vmatpush.msra.mxu3 %v609_v27 }
 0x129   :  { %505 = vmatpush.msrb.mxu1 %v1262_v13 }
 0x12a   :  { %662 = vmatpush.msra.mxu3 %v608_v28  ;;  %v364_v30 = vpop.f32.mrf.mxu0 }
 0x12b   :  { %464 = vst [vmem:[#allocation7 + $0x80] sm:$0xff] %v364_v30  ;;  %506 = vmatpush.msrb.mxu1 %v1254_v11  ;;  %v601_v39 = vmul.f32 %v364_v30, %v364_v30  ;;  %v633_v11 = vmul.f32 %v1287_v18, %v1287_v18 }
 0x12c   :  { %663 = vmatpush.msra.mxu3 %v607_v29 }
 0x12d   :  { %507 = vmatpush.msrb.mxu1 %v1247_v9  ;;  %v631_v9 = vmul.f32 %v1237_v5, %v1237_v5  ;;  %v590_v5 = vmul.f32 %v1192_v54, %v1192_v54 }
 0x12e   :  { %664 = vmatpush.msra.mxu3 %v606_v31 }
 0x12f   :  { %508 = vmatpush.msrb.mxu1 %v1240_v6  ;;  %v592_v6 = vmul.f32 %v1216_v62, %v1216_v62 }
 0x130   :  { %665 = vmatpush.msra.mxu3 %v605_v32 }
 0x131   :  { %509 = vmatpush.msrb.mxu1 %v1228_v2  ;;  %v629_v2 = vmul.f32 %v1213_v61, %v1213_v61  ;;  %v588_v61 = vmul.f32 %v1168_v46, %v1168_v46 }
 0x132   :  { %666 = vmatpush.msra.mxu3 %v604_v33  ;;  %v366_v40 = vpop.f32.mrf.mxu0 }
 0x133   :  { %465 = vst [vmem:[#allocation7 + $0x88] sm:$0xff] %v366_v40  ;;  %v602_v44 = vmul.f32 %v366_v40, %v366_v40  ;;  %510 = vmatpush.msrb.mxu1 %v1216_v62  ;;  %536 = vmatpush.msrb.mxu2 %v366_v40  ;;  %v628_v62 = vmul.f32 %v1201_v57, %v1201_v57 }
 0x134   :  { %667 = vmatpush.msra.mxu3 %v603_v34  ;;  %v587_v57 = vmul.f32 %v1154_v42, %v1154_v42  ;;  %728 = dma.vmem_to_hbm [thread:$0]  %s721_s29, 6272, %s723_s27, [#allocation4], %s1098_s30, %s1098_s30, %s1099_s5  }
 0x135   :  { %511 = vmatpush.msrb.mxu1 %v1204_v58  ;;  %537 = vmatpush.msrb.mxu2 %v364_v30  ;;  %v627_v58 = vmul.f32 %v1189_v53, %v1189_v53  ;;  %v586_v53 = vmul.f32 %v1142_v38, %v1142_v38 }
 0x136   :  { %668 = vmatpush.msra.mxu3 %v602_v44  ;;  %538 = vmatmul.f32.vlgmr.msrb.gmra.mxu2 %v1096_v21 }
 0x137   :  { %634 = vmatpush.msra.mxu2 %v600_v43  ;;  %512 = vmatpush.msrb.mxu1 %v1192_v54  ;;  %v626_v54 = vmul.f32 %v1177_v49, %v1177_v49  ;;  %v585_v49 = vmul.f32 %v1133_v35, %v1133_v35 }
 0x138   :  { %669 = vmatpush.msra.mxu3 %v601_v39 }
 0x139   :  { %635 = vmatpush.msra.mxu2 %v599_v47  ;;  %513 = vmatpush.msrb.mxu1 %v1180_v50  ;;  %v625_v50 = vmul.f32 %v1165_v45, %v1165_v45  ;;  %v618_v45 = vmul.f32 %v1186_v52, %v1186_v52 }
 0x13a   :  { %670 = vmatmul.f32.vlgmr.msra.gmra.mxu3 %v1096_v21 }
 0x13b   :  { %636 = vmatpush.msra.mxu2 %v598_v36  ;;  %514 = vmatpush.msrb.mxu1 %v1168_v46  ;;  %v624_v46 = vmul.f32 %v1151_v41, %v1151_v41  ;;  %v621_v41 = vmul.f32 %v1222_v0, %v1222_v0 }
 0x13d   :  { %637 = vmatpush.msra.mxu2 %v597_v51  ;;  %515 = vmatpush.msrb.mxu1 %v1154_v42  ;;  %v623_v42 = vmul.f32 %v1139_v37, %v1139_v37  ;;  %v619_v37 = vmul.f32 %v1198_v56, %v1198_v56 }
 0x13f   :  { %638 = vmatpush.msra.mxu2 %v596_v55  ;;  %516 = vmatpush.msrb.mxu1 %v1142_v38  ;;  %v622_v38 = vmul.f32 %v1234_v4, %v1234_v4  ;;  %v617_v4 = vmul.f32 %v1174_v48, %v1174_v48 }
 0x141   :  { %639 = vmatpush.msra.mxu2 %v595_v59  ;;  %517 = vmatpush.msrb.mxu1 %v1133_v35  ;;  %v620_v35 = vmul.f32 %v1210_v60, %v1210_v60 }
 0x142   :  { %518 = vmatmul.f32.vlgmr.msrb.gmra.mxu1 %v1096_v21 }
 0x143   :  { %577 = vmatpush.msra.mxu1 %v1287_v18  ;;  %640 = vmatpush.msra.mxu2 %v594_v63 }
 0x145   :  { %674 = vmatpush.msrb.mxu1 %v632_v3  ;;  %641 = vmatpush.msra.mxu2 %v593_v7 }
 0x147   :  { %675 = vmatpush.msrb.mxu1 %v631_v9  ;;  %642 = vmatpush.msra.mxu2 %v592_v6 }
 0x149   :  { %676 = vmatpush.msrb.mxu1 %v630_v10  ;;  %643 = vmatpush.msra.mxu2 %v591_v8 }
 0x14a   :  { %895 = vmatmul.msk.f32.vlgmr.msra.gmra.mxu1 %vm498_vm0, %v1096_v21 }
 0x14b   :  { %677 = vmatpush.msrb.mxu1 %v629_v2  ;;  %644 = vmatpush.msra.mxu2 %v590_v5 }
 0x14d   :  { %678 = vmatpush.msrb.mxu1 %v628_v62  ;;  %645 = vmatpush.msra.mxu2 %v589_v1 }
 0x14f   :  { %679 = vmatpush.msrb.mxu1 %v627_v58  ;;  %646 = vmatpush.msra.mxu2 %v588_v61 }
 0x151   :  { %680 = vmatpush.msrb.mxu1 %v626_v54  ;;  %647 = vmatpush.msra.mxu2 %v587_v57 }
 0x153   :  { %681 = vmatpush.msrb.mxu1 %v625_v50  ;;  %648 = vmatpush.msra.mxu2 %v586_v53 }
 0x155   :  { %682 = vmatpush.msrb.mxu1 %v624_v46  ;;  %649 = vmatpush.msra.mxu2 %v585_v49 }
 0x156   :  { %650 = vmatmul.f32.vlgmr.msra.gmra.mxu2 %v1096_v21 }
 0x157   :  { %683 = vmatpush.msrb.mxu1 %v623_v42  ;;  %709 = vmatpush.msrb.mxu2 %v633_v11 }
 0x159   :  { %684 = vmatpush.msrb.mxu1 %v622_v38 }
 0x15b   :  { %685 = vmatpush.msrb.mxu1 %v621_v41 }
 0x15d   :  { %686 = vmatpush.msrb.mxu1 %v620_v35 }
 0x15e   :  { %896 = vmatmul.msk.f32.vlgmr.msrb.gmra.mxu2 %vm498_vm0, %v1096_v21 }
 0x15f   :  { %687 = vmatpush.msrb.mxu1 %v619_v37 }
 0x161   :  { %688 = vmatpush.msrb.mxu1 %v618_v45 }
 0x163   :  { %689 = vmatpush.msrb.mxu1 %v617_v4 }
 0x164   :  { %690 = vmatmul.f32.vlgmr.msrb.gmra.mxu1 %v1096_v21 }
 0x19c   :  { %v559_v0 = vpop.f32.mrf.mxu3 }
 0x1b9   :  { %v539_v56 = vpop.f32.mrf.mxu2 }
 0x1bd   :  { %v671_v15 = vpop.f32.mrf.mxu3 }
 0x1bf   :  { %v519_v52 = vpop.f32.mrf.mxu1 }
 0x1c0   :  { %v540_v60 = vadd.f32 %v539_v56, %v519_v52 }
 0x1c2   :  { %v560_v48 = vadd.f32 %v559_v0, %v540_v60 }
 0x1c7   :  { %v579_v12 = vpop.f32.mrf.mxu1 }
 0x1c8   :  { %v580_v13 = vadd.f32 %v579_v12, %v560_v48 }
 0x1ca   :  { %583 = vst [vmem:[#allocation8] sm:$0xff] %v580_v13 }
 0x1cb   :  { %739 = dma.vmem_to_hbm [thread:$0]  %s735_s7, 128, %s737_s10, [#allocation9]  }
 0x1d9   :  { %v651_v14 = vpop.f32.mrf.mxu2 }
 0x1da   :  { %v672_v16 = vadd.f32 %v671_v15, %v651_v14 }
 0x1e1   :  { %v691_v17 = vpop.f32.mrf.mxu1  ;;  %v711_v19 = vpop.f32.mrf.mxu2 }
 0x1e2   :  { %v692_v18 = vadd.f32 %v691_v17, %v672_v16 }
 0x1e4   :  { %v712_v20 = vadd.f32 %v711_v19, %v692_v18 }
 0x1e6   :  { %715 = vst [vmem:[#allocation10] sm:$0xff] %v712_v20 }
 0x1e7   :  { %750 = dma.vmem_to_hbm [thread:$0]  %s746_s11, 128, %s748_s14, [#allocation9]  }
 0x1e8   :  { %1088 = dma.done.wait [#allocation4], 6272  }
 0x1e9   :  { %1089 = vsyncadd [#allocation4], 4294961024 }
 0x1ea   :  { %1090 = dma.done.wait [#allocation9], 256  }
 0x1eb   :  { %1091 = vsyncadd [#allocation9], 4294967040 }
 0x1ec   :  { %763 = vsyncpa [#allocation3], 1 }
 0x1ed   :  { %764 = vsyncpa [#allocation6], 1 }
 0x1ee   :  { %765 = vsyncpa [#allocation4], 1 }
 0x1ef   :  { %766 = vsyncpa [#allocation9], 1 }

</bundles_post_ra>
